<compile_context>
chip_gen: v7x
topology: tpu7x:2x2x1
jax: 0.10.0
libtpu: 0.0.40
codegen_flags: <defaults>
</compile_context>

<pallas_src>
import jax
import jax.numpy as jnp
from jax.experimental import pallas as pl
from jax.experimental.pallas import tpu as pltpu

LANE = 128  # pad contraction (K), conv-feature (F) and hidden (Hd) dims to this


def im2col_3x3(x_nchw):
    """x: [B, C, H, W] -> patches [B, H*W, C*9] (pad=1, stride=1).

    Column ordering is (c outer, (kh, kw) inner), matching a PyTorch conv
    weight [F, C, 3, 3] reshaped/transposed to [C*9, F].
    """
    B, C, H, W = x_nchw.shape
    xp = jnp.pad(x_nchw, ((0, 0), (0, 0), (1, 1), (1, 1)))
    cols = []
    for dh in range(3):
        for dw in range(3):
            cols.append(xp[:, :, dh:dh + H, dw:dw + W])      # [B, C, H, W]
    p = jnp.stack(cols, axis=2)                              # [B, C, 9, H, W]
    p = p.transpose(0, 3, 4, 1, 2)                           # [B, H, W, C, 9]
    return p.reshape(B, H * W, C * 9)


def make_brain_age_kernel(tb, hw):
    """Kernel closure over the (static) images-per-step and spatial size."""

    def brain_age_kernel(patches_ref, w_conv_ref, w1_ref, aux_ref, out_ref):
        # aux rows: 0 = conv bias, 1 = b1, 2 = w2^T, 3 = b2 (lane-replicated).
        aux = aux_ref[...]                                        # [8, 128] f32

        # Conv as one large lane-dense MXU matmul over TB images' patches.
        p = patches_ref[...]                                      # [TB*HW, 128] bf16
        conv = jnp.dot(p, w_conv_ref[...],
                       preferred_element_type=jnp.float32)        # [TB*HW, 128] f32
        conv = jnp.maximum(conv + aux[0:1, :], 0.0)               # + bias, ReLU

        # Per-image global average pool (sublane reduce inside each HW slab).
        pooled = jnp.mean(conv.reshape(tb, hw, LANE), axis=1)     # [TB, 128]

        # Regression head: Linear(F->Hd) -> ReLU -> (Dropout = Id) -> Linear(Hd->1).
        h = jnp.dot(pooled, w1_ref[...],
                    preferred_element_type=jnp.float32) + aux[1:2, :]
        h = jnp.maximum(h, 0.0)                                   # [TB, 128]

        # Final Hd->1 linear on the VPU/XLU (lane mul + lane-sum); no MXU push.
        age = jnp.sum(h * aux[2:3, :], axis=-1, keepdims=True)    # [TB, 1]

        # Lane-dense store: age broadcast across 128 lanes + b2 (replicated row).
        out_ref[0] = age + aux[3:4, :]                            # [TB, 128]

    return brain_age_kernel


def brain_age_forward(x_nchw, params, target_rows=512):
    B, C, H, W = x_nchw.shape
    HW = H * W
    K = C * 9
    F = params['w_conv'].shape[1]
    Hd = params['w1'].shape[1]
    assert K <= LANE and F <= LANE and Hd <= LANE, \
        "demo-size padded-lane path assumes K, F, Hd <= 128"
    # TODO(synk): K/F/Hd > 128 needs a tiled-contraction fallback before production.

    # Images per grid step: collapse batch so each step streams >= target_rows
    # rows of patches into a single [TILE_M, 128] @ [128, 128] matmul.
    tb = max(1, min(B, max(1, target_rows // HW)))
    while B % tb:
        tb -= 1
    TILE_M = tb * HW
    G = B // tb

    # im2col in the XLA wrapper, zero-padded to 128 lanes, streamed as bf16.
    patches = im2col_3x3(x_nchw).astype(jnp.float32)              # [B, HW, K]
    patches = jnp.pad(patches, ((0, 0), (0, 0), (0, LANE - K)))
    patches = patches.reshape(B * HW, LANE).astype(jnp.bfloat16)  # [B*HW, 128]

    # Weights zero-padded to the lane width (numerically exact, see header).
    w_conv = jnp.pad(params['w_conv'].astype(jnp.float32),
                     ((0, LANE - K), (0, LANE - F))).astype(jnp.bfloat16)  # [128,128]
    w1 = jnp.pad(params['w1'].astype(jnp.float32),
                 ((0, LANE - F), (0, LANE - Hd)))                           # [128,128]

    # All tiny head operands packed into a single (8, 128) f32 tile.
    aux = jnp.zeros((8, LANE), jnp.float32)
    aux = aux.at[0, :F].set(params['b_conv'].reshape(-1))   # conv bias
    aux = aux.at[1, :Hd].set(params['b1'].reshape(-1))      # b1
    aux = aux.at[2, :Hd].set(params['w2'].reshape(-1))      # w2^T
    aux = aux.at[3, :].set(params['b2'].reshape(()))        # b2, lane-replicated

    out = pl.pallas_call(
        make_brain_age_kernel(tb, HW),
        out_shape=jax.ShapeDtypeStruct((G, tb, LANE), jnp.float32),
        grid_spec=pltpu.PrefetchScalarGridSpec(
            num_scalar_prefetch=0,
            grid=(G,),
            in_specs=[
                pl.BlockSpec((TILE_M, LANE), lambda m: (m, 0)),   # patches (streamed)
                pl.BlockSpec((LANE, LANE), lambda m: (0, 0)),     # w_conv (resident)
                pl.BlockSpec((LANE, LANE), lambda m: (0, 0)),     # w1 (resident)
                pl.BlockSpec((8, LANE), lambda m: (0, 0)),        # packed biases + w2
            ],
            out_specs=pl.BlockSpec((1, tb, LANE), lambda m: (m, 0, 0)),
        ),
        compiler_params=pltpu.CompilerParams(
            dimension_semantics=("parallel",),       # batch groups shard over TCs
            vmem_limit_bytes=32 * 1024 * 1024,       # portable incl. 64 MiB v7x VMEM
        ),
    )(patches, w_conv, w1, aux)

    # Lane-dense output block; the predicted age is identical in every lane.
    return out.reshape(B, LANE)[:, :1]               # [B, 1]


def reference_forward(x_nchw, params):
    """Pure-JAX reference (same bf16 conv operands, f32 accumulation)."""
    patches = im2col_3x3(x_nchw).astype(jnp.bfloat16)             # [B, HW, K]
    wc = params['w_conv'].astype(jnp.bfloat16)
    conv = jnp.einsum('bpk,kf->bpf', patches, wc,
                      preferred_element_type=jnp.float32)
    conv = jnp.maximum(conv + params['b_conv'], 0.0)              # [B, HW, F]
    pooled = conv.mean(axis=1)                                    # [B, F]
    h = jnp.maximum(pooled @ params['w1'] + params['b1'], 0.0)
    return h @ params['w2'] + params['b2']                        # [B, 1]


def init_params(key, in_channels=4, conv_feat=32, hidden=32):
    k = jax.random.split(key, 6)
    K = in_channels * 9
    return {
        'w_conv': 0.1 * jax.random.normal(k[0], (K, conv_feat), jnp.float32),
        'b_conv': 0.1 * jax.random.normal(k[1], (1, conv_feat), jnp.float32),
        'w1':     0.1 * jax.random.normal(k[2], (conv_feat, hidden), jnp.float32),
        'b1':     0.1 * jax.random.normal(k[3], (1, hidden), jnp.float32),
        'w2':     0.1 * jax.random.normal(k[4], (hidden, 1), jnp.float32),
        'b2':     0.1 * jax.random.normal(k[5], (1, 1), jnp.float32),
    }


if __name__ == "__main__":
    key = jax.random.PRNGKey(0)
    kx, kp = jax.random.split(key)

    B, C, H, W = 2, 4, 16, 16
    x = jax.random.normal(kx, (B, C, H, W), jnp.float32)          # NCHW, like PyTorch
    params = init_params(kp, in_channels=C, conv_feat=32, hidden=32)

    age = brain_age_forward(x, params)
    age = jax.block_until_ready(age)

    ref = reference_forward(x, params)
    assert age.shape == (B, 1)
    assert jnp.allclose(age, ref, atol=1e-3, rtol=1e-3), (age, ref)

    print("KERNEL_OK")
</pallas_src>

<mosaic_0001>
module attributes {stable_mosaic.version = 11 : i64} {
  func.func @brain_age_kernel(%arg0: i32, %arg1: memref<512x128xbf16, #tpu.memory_space<vmem>>, %arg2: memref<128x128xbf16, #tpu.memory_space<vmem>>, %arg3: memref<128x128xf32, #tpu.memory_space<vmem>>, %arg4: memref<8x128xf32, #tpu.memory_space<vmem>>, %arg5: memref<1x2x128xf32, #tpu.memory_space<vmem>>) attributes {dimension_semantics = [#tpu.dimension_semantics<parallel>], iteration_bounds = array<i64: 1>, scalar_prefetch = 0 : i64, scratch_operands = 0 : i64, tpu.core_type = #tpu.core_type<tc>, window_params = [{transform_indices = @transform_0, window_bounds = array<i64: 512, 128>}, {pipeline_mode = #tpu.pipeline_mode<synchronous>, transform_indices = @transform_1, window_bounds = array<i64: 128, 128>}, {pipeline_mode = #tpu.pipeline_mode<synchronous>, transform_indices = @transform_2, window_bounds = array<i64: 128, 128>}, {pipeline_mode = #tpu.pipeline_mode<synchronous>, transform_indices = @transform_3, window_bounds = array<i64: 8, 128>}, {transform_indices = @transform_4, window_bounds = array<i64: 1, 2, 128>}]} {
    %c0 = arith.constant 0 : index
    %c0_0 = arith.constant 0 : index
    %0 = vector.load %arg4[%c0, %c0_0] : memref<8x128xf32, #tpu.memory_space<vmem>>, vector<8x128xf32>
    %c0_1 = arith.constant 0 : index
    %c0_2 = arith.constant 0 : index
    %1 = vector.load %arg1[%c0_1, %c0_2] : memref<512x128xbf16, #tpu.memory_space<vmem>>, vector<512x128xbf16>
    %c0_3 = arith.constant 0 : index
    %c0_4 = arith.constant 0 : index
    %2 = vector.load %arg2[%c0_3, %c0_4] : memref<128x128xbf16, #tpu.memory_space<vmem>>, vector<128x128xbf16>
    %cst = arith.constant dense<0.000000e+00> : vector<512x128xf32>
    %3 = tpu.matmul %1, %2, %cst {dimension_numbers = #tpu.dot_dimension_numbers<[1], [0], [0], [1], [0, 0, 1, 1], [], []>} : vector<512x128xbf16>, vector<128x128xbf16>, vector<512x128xf32> -> vector<512x128xf32>
    %4 = vector.extract_strided_slice %0 {offsets = [0, 0], sizes = [1, 128], strides = [1, 1]} : vector<8x128xf32> to vector<1x128xf32>
    %5 = vector.broadcast %4 : vector<1x128xf32> to vector<512x128xf32>
    %6 = arith.addf %3, %5 : vector<512x128xf32>
    %cst_5 = arith.constant 0.000000e+00 : f32
    %7 = vector.broadcast %cst_5 : f32 to vector<512x128xf32>
    %8 = arith.maximumf %6, %7 : vector<512x128xf32>
    %9 = vector.shape_cast %8 : vector<512x128xf32> to vector<2x256x128xf32>
    %cst_6 = arith.constant dense<0.000000e+00> : vector<2x128xf32>
    %10 = vector.multi_reduction <add>, %9, %cst_6 [1] : vector<2x256x128xf32> to vector<2x128xf32>
    %cst_7 = arith.constant 2.560000e+02 : f32
    %11 = vector.broadcast %cst_7 : f32 to vector<2x128xf32>
    %12 = arith.divf %10, %11 : vector<2x128xf32>
    %c0_8 = arith.constant 0 : index
    %c0_9 = arith.constant 0 : index
    %13 = vector.load %arg3[%c0_8, %c0_9] : memref<128x128xf32, #tpu.memory_space<vmem>>, vector<128x128xf32>
    %cst_10 = arith.constant dense<0.000000e+00> : vector<2x128xf32>
    %14 = tpu.matmul %12, %13, %cst_10 {dimension_numbers = #tpu.dot_dimension_numbers<[1], [0], [0], [1], [0, 0, 1, 1], [], []>} : vector<2x128xf32>, vector<128x128xf32>, vector<2x128xf32> -> vector<2x128xf32>
    %15 = vector.extract_strided_slice %0 {offsets = [1, 0], sizes = [1, 128], strides = [1, 1]} : vector<8x128xf32> to vector<1x128xf32>
    %16 = vector.broadcast %15 : vector<1x128xf32> to vector<2x128xf32>
    %17 = arith.addf %14, %16 : vector<2x128xf32>
    %cst_11 = arith.constant 0.000000e+00 : f32
    %18 = vector.broadcast %cst_11 : f32 to vector<2x128xf32>
    %19 = arith.maximumf %17, %18 : vector<2x128xf32>
    %20 = vector.extract_strided_slice %0 {offsets = [2, 0], sizes = [1, 128], strides = [1, 1]} : vector<8x128xf32> to vector<1x128xf32>
    %21 = vector.broadcast %20 : vector<1x128xf32> to vector<2x128xf32>
    %22 = arith.mulf %19, %21 : vector<2x128xf32>
    %cst_12 = arith.constant dense<0.000000e+00> : vector<2xf32>
    %23 = vector.multi_reduction <add>, %22, %cst_12 [1] : vector<2x128xf32> to vector<2xf32>
    %24 = vector.shape_cast %23 : vector<2xf32> to vector<2x1xf32>
    %25 = vector.extract_strided_slice %0 {offsets = [3, 0], sizes = [1, 128], strides = [1, 1]} : vector<8x128xf32> to vector<1x128xf32>
    %26 = vector.broadcast %24 : vector<2x1xf32> to vector<2x128xf32>
    %27 = vector.broadcast %25 : vector<1x128xf32> to vector<2x128xf32>
    %28 = arith.addf %26, %27 : vector<2x128xf32>
    %c0_13 = arith.constant 0 : index
    %c0_14 = arith.constant 0 : index
    %c0_15 = arith.constant 0 : index
    %29 = vector.load %arg5[%c0_13, %c0_14, %c0_15] : memref<1x2x128xf32, #tpu.memory_space<vmem>>, vector<1x2x128xf32>
    %30 = vector.shape_cast %29 : vector<1x2x128xf32> to vector<2x128xf32>
    %31 = vector.shape_cast %28 : vector<2x128xf32> to vector<1x2x128xf32>
    tpu.vector_store %arg5[%c0_13, %c0_14, %c0_15], %31 {strides = array<i32>} : memref<1x2x128xf32, #tpu.memory_space<vmem>>, vector<1x2x128xf32>,
    return
  }
  func.func @transform_0(%arg0: i32) -> (i32, i32) {
    %c0_i32 = arith.constant 0 : i32
    %c0_i32_0 = arith.constant 0 : i32
    return %arg0, %c0_i32 : i32, i32
  }
  func.func @transform_1(%arg0: i32) -> (i32, i32) {
    %c0_i32 = arith.constant 0 : i32
    %c0_i32_0 = arith.constant 0 : i32
    %c0_i32_1 = arith.constant 0 : i32
    return %c0_i32, %c0_i32_0 : i32, i32
  }
  func.func @transform_2(%arg0: i32) -> (i32, i32) {
    %c0_i32 = arith.constant 0 : i32
    %c0_i32_0 = arith.constant 0 : i32
    %c0_i32_1 = arith.constant 0 : i32
    return %c0_i32, %c0_i32_0 : i32, i32
  }
  func.func @transform_3(%arg0: i32) -> (i32, i32) {
    %c0_i32 = arith.constant 0 : i32
    %c0_i32_0 = arith.constant 0 : i32
    %c0_i32_1 = arith.constant 0 : i32
    return %c0_i32, %c0_i32_0 : i32, i32
  }
  func.func @transform_4(%arg0: i32) -> (i32, i32, i32) {
    %c0_i32 = arith.constant 0 : i32
    %c0_i32_0 = arith.constant 0 : i32
    %c0_i32_1 = arith.constant 0 : i32
    return %arg0, %c0_i32, %c0_i32_0 : i32, i32, i32
  }
}

</mosaic_0001>

<bundles_post_ra>
// kernel: tpu_custom_call.1
= control target key start
LH: loop header
LB: loop body
LE: loop exit
PB: predicated region body
PF: predicated region fallthrough
CT: control target
= control target key end

     0   :  { %9 = vsyncpa [#allocation3], 0  ;;  %s1607_s0 = inlined_call_operand.hbm [shape: bf16[512,128], index: 0, kind: input, shape index: {}]   ;;  %s1608_s1 = inlined_call_operand.hbm [shape: bf16[128,128], index: 1, kind: input, shape index: {}]   ;;  %s1609_s2 = inlined_call_operand.hbm [shape: f32[128,128], index: 2, kind: input, shape index: {}]   ;;  %s1610_s3 = inlined_call_operand.vmem [shape: f32[8,128], index: 3, kind: input, shape index: {}]   ;;  %s1611_s4 = inlined_call_operand.hbm [shape: f32[1,2,128], index: 4, kind: output, shape index: {}]  }
   0x1   :  { %10 = vsyncpa [#allocation6], 0 }
   0x2   :  { %11 = vsyncpa [#allocation4], 0  ;;  %s1339_s15 = smov [#allocation5]   ;;  %s1340_s17 = smov [#allocation2]  }
   0x3   :  { %s29_s16 = sshll.u32 %s1339_s15, 4  ;;  %s17_s18 = sshll.u32 %s1340_s17, 4  ;;  %s30_s16 = int_to_ptr.vmem [resolvable:$true] %s29_s16  ;;  %s1375_s18 = int_to_ptr.vmem [resolvable:$true] %s17_s18 }
   0x4   :  { %s1245_s21 = scalar_lea.hbm %s1608_s1, 1024 }
   0x5   :  { %p1246_p0 = scmp.ne.s32.totalorder %s1608_s1, %s1245_s21  ;;  %p1249_p1 = scmp.lt.u32.totalorder %s1245_s21, %s1608_s1 }
   0x7   :  { %p1251_p2 = pnand %p1249_p1, %p1246_p0 }
   0x9   :  { %1254 = shalt.err (!%p1251_p2)
}
   0xa   :  { %s1255_s26 = scalar_lea.vmem %s30_s16, 1024  ;;  %p1260_p4 = scmp.lt.s32.totalorder %s30_s16, %s30_s16 }
   0xb   :  { %p1256_p3 = scmp.ne.s32.totalorder %s30_s16, %s1255_s26  ;;  %p1261_p5 = scmp.lt.s32.totalorder %s1255_s26, %s1255_s26 }
   0xd   :  { %p1262_p6 = por %p1261_p5, %p1260_p4 }
   0xf   :  { %p1263_p7 = pnand %p1262_p6, %p1256_p3 }
  0x11   :  { %1266 = shalt.err (!%p1263_p7)
}
  0x12   :  { %s1341_s27 = smov 64   ;;  %s1342_s28 = smov 4  }
  0x13   :  { %35 = dma.hbm_to_vmem [thread:$0]  %s1608_s1, 1024, %s30_s16, [#allocation6], %s1341_s27, %s1341_s27, %s1342_s28  }
  0x14   :  { %s1267_s7 = scalar_lea.hbm %s1607_s0, 4096 }
  0x15   :  { %p1268_p8 = scmp.ne.s32.totalorder %s1607_s0, %s1267_s7  ;;  %p1271_p9 = scmp.lt.u32.totalorder %s1267_s7, %s1607_s0 }
  0x17   :  { %p1273_p10 = pnand %p1271_p9, %p1268_p8 }
  0x19   :  { %1276 = shalt.err (!%p1273_p10)
}
  0x1a   :  { %s1277_s12 = scalar_lea.vmem %s1375_s18, 4096  ;;  %p1282_p12 = scmp.lt.s32.totalorder %s1375_s18, %s1375_s18 }
  0x1b   :  { %p1278_p11 = scmp.ne.s32.totalorder %s1375_s18, %s1277_s12  ;;  %p1283_p13 = scmp.lt.s32.totalorder %s1277_s12, %s1277_s12 }
  0x1d   :  { %p1284_p0 = por %p1283_p13, %p1282_p12 }
  0x1f   :  { %p1285_p1 = pnand %p1284_p0, %p1278_p11 }
  0x21   :  { %1288 = shalt.err (!%p1285_p1)
}
  0x22   :  { %23 = dma.hbm_to_vmem [thread:$0]  %s1607_s0, 4096, %s1375_s18, [#allocation3], %s1341_s27, %s1341_s27, %s1342_s28  }
  0x23   :  { %s1343_s14 = smov [#allocation7]   ;;  %s1289_s19 = scalar_lea.hbm %s1609_s2, 2048 }
  0x24   :  { %s41_s15 = sshll.u32 %s1343_s14, 4  ;;  %p1290_p2 = scmp.ne.s32.totalorder %s1609_s2, %s1289_s19  ;;  %s42_s15 = int_to_ptr.vmem [resolvable:$true] %s41_s15 }
  0x25   :  { %p1293_p3 = scmp.lt.u32.totalorder %s1289_s19, %s1609_s2 }
  0x27   :  { %p1295_p4 = pnand %p1293_p3, %p1290_p2 }
  0x29   :  { %1298 = shalt.err (!%p1295_p4)
}
  0x2a   :  { %s1299_s24 = scalar_lea.vmem %s42_s15, 2048  ;;  %p1304_p6 = scmp.lt.s32.totalorder %s42_s15, %s42_s15 }
  0x2b   :  { %p1300_p5 = scmp.ne.s32.totalorder %s42_s15, %s1299_s24  ;;  %p1305_p7 = scmp.lt.s32.totalorder %s1299_s24, %s1299_s24 }
  0x2d   :  { %p1306_p8 = por %p1305_p7, %p1304_p6 }
  0x2f   :  { %p1307_p9 = pnand %p1306_p8, %p1300_p5 }
  0x31   :  { %1310 = shalt.err (!%p1307_p9)
}
  0x32   :  { %s1344_s0 = smov 128   ;;  %s1345_s18 = smov 8  }
  0x33   :  { %47 = dma.hbm_to_vmem [thread:$0]  %s1609_s2, 2048, %s42_s15, [#allocation6], %s1344_s0, %s1344_s0, %s1345_s18  }
  0x34   :  { %1333 = dma.done.wait [#allocation3], 4096  }
  0x35   :  { %1334 = vsyncadd [#allocation3], 4294963200 }
  0x36   :  { %1335 = dma.done.wait [#allocation6], 3072  }
  0x37   :  { %1336 = vsyncadd [#allocation6], 4294964224  ;;  %v1205_v0 = vld [vmem:[#allocation5] sm:$0xff]   ;;  %v1206_v1 = vld [vmem:[#allocation5 + $0x8] sm:$0xff]   ;;  %v1346_v42 = vmov 0.0|0.0   ;;  %v141_v47 = vlaneseq  ;;  %vm1347_vm0 = vmmov 0  }
  0x38   :  { %1039 = vmatprep.subr.bf16.mxu0 %v1205_v0  ;;  %1178 = vmatprep.subr.bf16.mxu1 %v1205_v0  ;;  %v1207_v2 = vld [vmem:[#allocation5 + $0x10] sm:$0xff]   ;;  %v1208_v3 = vld [vmem:[#allocation5 + $0x18] sm:$0xff]   ;;  %v1213_v4 = vld [vmem:[#allocation2] sm:$0xff]   ;;  %vm837_vm1 = vcmask 1041409   ;;  %vm916_vm2 = vcmask 1041408  }
  0x39   :  { %1040 = vmatpush3.bf16.msra.mxu0 %v1205_v0  ;;  %1186 = vmatpush3.bf16.msra.mxu1 %v1205_v0  ;;  %v1209_v5 = vld [vmem:[#allocation5 + $0x20] sm:$0xff]   ;;  %v1210_v6 = vld [vmem:[#allocation5 + $0x28] sm:$0xff]   ;;  %v1211_v7 = vld [vmem:[#allocation5 + $0x30] sm:$0xff]   ;;  %v1421_v51 = vshrl.u32 %v141_v47, 7 }
  0x3a   :  { %1041 = vmatprep.subr.bf16.mxu0 %v1206_v1  ;;  %1179 = vmatprep.subr.bf16.mxu1 %v1206_v1  ;;  %v1212_v8 = vld [vmem:[#allocation5 + $0x38] sm:$0xff]   ;;  %v1231_v9 = vld [vmem:[#allocation2 + $0x90] sm:$0xff]   ;;  %v1214_v10 = vld [vmem:[#allocation2 + $0x8] sm:$0xff]  }
  0x3b   :  { %1055 = vmatprep.mubr.bf16.mxu0 %v1213_v4  ;;  %v1215_v11 = vld [vmem:[#allocation2 + $0x10] sm:$0xff]   ;;  %1091 = vmatprep.mubr.bf16.mxu1 %v1231_v9  ;;  %v1232_v12 = vld [vmem:[#allocation2 + $0x98] sm:$0xff]   ;;  %v1233_v13 = vld [vmem:[#allocation2 + $0xa0] sm:$0xff]   ;;  %v143_v52 = vsub.s32 0, %v1421_v51 }
  0x3c   :  { %v1216_v14 = vld [vmem:[#allocation2 + $0x18] sm:$0xff]   ;;  %v1217_v15 = vld [vmem:[#allocation2 + $0x20] sm:$0xff]   ;;  %v1234_v16 = vld [vmem:[#allocation2 + $0xa8] sm:$0xff]  }
  0x3d   :  { %1042 = vmatpush3.bf16.msra.mxu0 %v1206_v1  ;;  %1187 = vmatpush3.bf16.msra.mxu1 %v1206_v1  ;;  %v1235_v17 = vld [vmem:[#allocation2 + $0xb0] sm:$0xff]   ;;  %v1218_v18 = vld [vmem:[#allocation2 + $0x28] sm:$0xff]   ;;  %v1236_v19 = vld [vmem:[#allocation2 + $0xb8] sm:$0xff]  }
  0x3e   :  { %1043 = vmatprep.subr.bf16.mxu0 %v1207_v2  ;;  %1180 = vmatprep.subr.bf16.mxu1 %v1207_v2  ;;  %v1219_v20 = vld [vmem:[#allocation2 + $0x30] sm:$0xff]   ;;  %v1237_v21 = vld [vmem:[#allocation2 + $0xc0] sm:$0xff]   ;;  %v1220_v22 = vld [vmem:[#allocation2 + $0x38] sm:$0xff]  }
  0x3f   :  { %v1238_v23 = vld [vmem:[#allocation2 + $0xc8] sm:$0xff]   ;;  %v1221_v24 = vld [vmem:[#allocation2 + $0x40] sm:$0xff]   ;;  %v1239_v25 = vld [vmem:[#allocation2 + $0xd0] sm:$0xff]  }
  0x40   :  { %v1222_v26 = vld [vmem:[#allocation2 + $0x48] sm:$0xff]   ;;  %v1240_v27 = vld [vmem:[#allocation2 + $0xd8] sm:$0xff]   ;;  %v1223_v28 = vld [vmem:[#allocation2 + $0x50] sm:$0xff]  }
  0x41   :  { %1044 = vmatpush3.bf16.msra.mxu0 %v1207_v2  ;;  %1188 = vmatpush3.bf16.msra.mxu1 %v1207_v2  ;;  %v1241_v29 = vld [vmem:[#allocation2 + $0xe0] sm:$0xff]   ;;  %v1224_v30 = vld [vmem:[#allocation2 + $0x58] sm:$0xff]   ;;  %v1242_v31 = vld [vmem:[#allocation2 + $0xe8] sm:$0xff]  }
  0x42   :  { %1045 = vmatprep.subr.bf16.mxu0 %v1208_v3  ;;  %1181 = vmatprep.subr.bf16.mxu1 %v1208_v3  ;;  %v1225_v32 = vld [vmem:[#allocation2 + $0x60] sm:$0xff]   ;;  %v1243_v33 = vld [vmem:[#allocation2 + $0xf0] sm:$0xff]   ;;  %v1226_v34 = vld [vmem:[#allocation2 + $0x68] sm:$0xff]  }
  0x43   :  { %v1244_v35 = vld [vmem:[#allocation2 + $0xf8] sm:$0xff]   ;;  %v1227_v36 = vld [vmem:[#allocation2 + $0x70] sm:$0xff]   ;;  %v1229_v38 = vld [vmem:[#allocation2 + $0x80] sm:$0xff]  }
  0x44   :  { %v1228_v37 = vld [vmem:[#allocation2 + $0x78] sm:$0xff]   ;;  %v1230_v39 = vld [vmem:[#allocation2 + $0x88] sm:$0xff]   ;;  %v815_v40 = vld [vmem:[#allocation7] sm:$0xff] }
  0x45   :  { %1046 = vmatpush3.bf16.msra.mxu0 %v1208_v3  ;;  %1189 = vmatpush3.bf16.msra.mxu1 %v1208_v3  ;;  %v816_v41 = vld [vmem:[#allocation7 + $0x8] sm:$0xff]  ;;  %v817_v44 = vld [vmem:[#allocation7 + $0x10] sm:$0xff]  ;;  %v818_v45 = vld [vmem:[#allocation7 + $0x18] sm:$0xff] }
  0x46   :  { %1047 = vmatprep.subr.bf16.mxu0 %v1209_v5  ;;  %1182 = vmatprep.subr.bf16.mxu1 %v1209_v5  ;;  %v1155_v43 = vpack.c.bf16 %v816_v41, %v815_v40  ;;  %v1158_v46 = vpack.c.bf16 %v818_v45, %v817_v44  ;;  %v819_v48 = vld [vmem:[#allocation7 + $0x20] sm:$0xff]  ;;  %v820_v49 = vld [vmem:[#allocation7 + $0x28] sm:$0xff]  ;;  %v821_v53 = vld [vmem:[#allocation7 + $0x30] sm:$0xff]  ;;  %v1348_v45 = vmov 0.0  }
  0x47   :  { %v1161_v50 = vpack.c.bf16 %v820_v49, %v819_v48  ;;  %v822_v54 = vld [vmem:[#allocation7 + $0x38] sm:$0xff]  ;;  %v1428_v55 = vld [vmem:[%s1610_s3] sm:$0xff]  ;;  %v824_v4 = vld [vmem:[#allocation7 + $0x48] sm:$0xff]  ;;  %s1349_s3 = smov [#allocation8]  }
  0x48   :  { %v1164_v56 = vpack.c.bf16 %v822_v54, %v821_v53  ;;  %v1431_v57 = vrot.slane %v1428_v55, %v143_v52  ;;  %v823_v3 = vld [vmem:[#allocation7 + $0x40] sm:$0xff]  ;;  %s932_s28 = sshll.u32 %s1349_s3, 4  ;;  %s933_s28 = int_to_ptr.vmem [resolvable:$true] %s932_s28 }
  0x49   :  { %1048 = vmatpush3.bf16.msra.mxu0 %v1209_v5  ;;  %1190 = vmatpush3.bf16.msra.mxu1 %v1209_v5  ;;  %s1311_s29 = scalar_lea.vmem %s933_s28, 32  ;;  %p1316_p11 = scmp.lt.s32.totalorder %s933_s28, %s933_s28 }
  0x4a   :  { %1049 = vmatprep.subr.bf16.mxu0 %v1210_v6  ;;  %1183 = vmatprep.subr.bf16.mxu1 %v1210_v6  ;;  %p1312_p10 = scmp.ne.s32.totalorder %s933_s28, %s1311_s29  ;;  %p1317_p12 = scmp.lt.s32.totalorder %s1311_s29, %s1311_s29 }
  0x4c   :  { %p1318_p13 = por %p1317_p12, %p1316_p11 }
  0x4d   :  { %1050 = vmatpush3.bf16.msra.mxu0 %v1210_v6  ;;  %1191 = vmatpush3.bf16.msra.mxu1 %v1210_v6 }
  0x4e   :  { %1051 = vmatprep.subr.bf16.mxu0 %v1211_v7  ;;  %1184 = vmatprep.subr.bf16.mxu1 %v1211_v7  ;;  %p1319_p0 = pnand %p1318_p13, %p1312_p10 }
  0x51   :  { %1052 = vmatpush3.bf16.msra.mxu0 %v1211_v7  ;;  %1192 = vmatpush3.bf16.msra.mxu1 %v1211_v7  ;;  %v1167_v7 = vpack.c.bf16 %v824_v4, %v823_v3 }
  0x52   :  { %1053 = vmatprep.subr.bf16.mxu0 %v1212_v8  ;;  %1185 = vmatprep.subr.bf16.mxu1 %v1212_v8 }
  0x55   :  { %1054 = vmatpush3.bf16.msra.mxu0 %v1212_v8  ;;  %1193 = vmatpush3.bf16.msra.mxu1 %v1212_v8 }
  0x56   :  { %1154 = vmatprep.subr.bf16.mxu1 %v1346_v42 }
  0x58   :  { %1056 = vmatmul.mubr.bf16.vlgmr.msra.gmra.mrb[0].mxu0 %v1214_v10  ;;  %1092 = vmatmul.mubr.bf16.vlgmr.msra.gmra.mrb[0].mxu1 %v1232_v12  ;;  %v826_v12 = vld [vmem:[#allocation7 + $0x58] sm:$0xff] }
  0x59   :  { %1059 = vmatprep.mubr.bf16.mxu0 %v1215_v11  ;;  %1095 = vmatprep.mubr.bf16.mxu1 %v1233_v13  ;;  %v825_v11 = vld [vmem:[#allocation7 + $0x50] sm:$0xff] }
  0x5a   :  { %1156 = vmatpush3.bf16.msra.mxu1 %v1155_v43 }
  0x5b   :  { %1157 = vmatprep.subr.bf16.mxu1 %v1346_v42 }
  0x5e   :  { %1159 = vmatpush3.bf16.msra.mxu1 %v1158_v46 }
  0x5f   :  { %1160 = vmatprep.subr.bf16.mxu1 %v1346_v42 }
  0x60   :  { %1060 = vmatmul.mubr.bf16.gmra.mrb[4].mxu0 %v1216_v14  ;;  %1096 = vmatmul.mubr.bf16.gmra.mrb[4].mxu1 %v1234_v16 }
  0x61   :  { %1063 = vmatprep.mubr.bf16.mxu0 %v1217_v15  ;;  %1099 = vmatprep.mubr.bf16.mxu1 %v1235_v17  ;;  %v1170_v17 = vpack.c.bf16 %v826_v12, %v825_v11 }
  0x62   :  { %1162 = vmatpush3.bf16.msra.mxu1 %v1161_v50 }
  0x63   :  { %1163 = vmatprep.subr.bf16.mxu1 %v1346_v42 }
  0x66   :  { %1165 = vmatpush3.bf16.msra.mxu1 %v1164_v56 }
  0x67   :  { %1166 = vmatprep.subr.bf16.mxu1 %v1346_v42 }
  0x68   :  { %1064 = vmatmul.mubr.bf16.gmra.mrb[8].mxu0 %v1218_v18  ;;  %1100 = vmatmul.mubr.bf16.gmra.mrb[8].mxu1 %v1236_v19 }
  0x69   :  { %1067 = vmatprep.mubr.bf16.mxu0 %v1219_v20  ;;  %1103 = vmatprep.mubr.bf16.mxu1 %v1237_v21 }
  0x6a   :  { %1168 = vmatpush3.bf16.msra.mxu1 %v1167_v7 }
  0x6b   :  { %1169 = vmatprep.subr.bf16.mxu1 %v1346_v42 }
  0x6e   :  { %1171 = vmatpush3.bf16.msra.mxu1 %v1170_v17 }
  0x6f   :  { %1172 = vmatprep.subr.bf16.mxu1 %v1346_v42 }
  0x70   :  { %1068 = vmatmul.mubr.bf16.gmra.mrb[12].mxu0 %v1220_v22  ;;  %1104 = vmatmul.mubr.bf16.gmra.mrb[12].mxu1 %v1238_v23 }
  0x71   :  { %1071 = vmatprep.mubr.bf16.mxu0 %v1221_v24  ;;  %1107 = vmatprep.mubr.bf16.mxu1 %v1239_v25 }
  0x78   :  { %1072 = vmatmul.mubr.bf16.gmra.mrb[16].mxu0 %v1222_v26  ;;  %1108 = vmatmul.mubr.bf16.gmra.mrb[16].mxu1 %v1240_v27  ;;  %v827_v27 = vld [vmem:[#allocation7 + $0x60] sm:$0xff] }
  0x79   :  { %1075 = vmatprep.mubr.bf16.mxu0 %v1223_v28  ;;  %1111 = vmatprep.mubr.bf16.mxu1 %v1241_v29  ;;  %v828_v28 = vld [vmem:[#allocation7 + $0x68] sm:$0xff] }
  0x80   :  { %1076 = vmatmul.mubr.bf16.gmra.mrb[20].mxu0 %v1224_v30  ;;  %1112 = vmatmul.mubr.bf16.gmra.mrb[20].mxu1 %v1242_v31 }
  0x81   :  { %1079 = vmatprep.mubr.bf16.mxu0 %v1225_v32  ;;  %1115 = vmatprep.mubr.bf16.mxu1 %v1243_v33  ;;  %v829_v33 = vld [vmem:[#allocation7 + $0x70] sm:$0xff] }
  0x88   :  { %1080 = vmatmul.mubr.bf16.gmra.mrb[24].mxu0 %v1226_v34  ;;  %1116 = vmatmul.mubr.bf16.gmra.mrb[24].mxu1 %v1244_v35  ;;  %v830_v34 = vld [vmem:[#allocation7 + $0x78] sm:$0xff]  ;;  %v1173_v35 = vpack.c.bf16 %v828_v28, %v827_v27 }
  0x89   :  { %1083 = vmatprep.mubr.bf16.mxu0 %v1227_v36  ;;  %1151 = vmatprep.mubr.msk.f32.mxu1 %vm1347_vm0, %v1348_v45 }
  0x8a   :  { %1174 = vmatpush3.bf16.msra.mxu1 %v1173_v35 }
  0x8b   :  { %1175 = vmatprep.subr.bf16.mxu1 %v1346_v42 }
  0x90   :  { %1084 = vmatmul.mubr.bf16.gmra.mrb[28].mxu0 %v1228_v37 }
  0x91   :  { %1087 = vmatprep.mubr.bf16.mxu0 %v1229_v38 }
  0x98   :  { %1088 = vmatmul.mubr.bf16.gmra.mrb[32].mxu0 %v1230_v39  ;;  %v1176_v39 = vpack.c.bf16 %v830_v34, %v829_v33 }
  0x9a   :  { %1177 = vmatpush3.bf16.msra.mxu1 %v1176_v39 }
 0x12b   :  { %v1057_v58 = vpop.f32.mrb[0].mxu0  ;;  %v1434_v59 = vpop.f32.mrb[0].mxu1 }
 0x12c   :  { %v419_v60 = vpop.f32.mrb[1].mxu0  ;;  %v1436_v61 = vpop.f32.mrb[1].mxu1  ;;  %v428_v5 = vadd.f32 %v1057_v58, %v1431_v57 }
 0x12d   :  { %v420_v62 = vadd.f32 %v419_v60, %v1431_v57  ;;  %v1058_v63 = vpop.f32.mrb[2].mxu0  ;;  %v1439_v0 = vpop.f32.mrb[2].mxu1 }
 0x12e   :  { %v422_v1 = vpop.f32.mrb[3].mxu0  ;;  %v1441_v2 = vpop.f32.mrb[3].mxu1  ;;  %v431_v9 = vadd.f32 %v1058_v63, %v1431_v57  ;;  %v676_v13 = vmax.f32 %v428_v5, 0.0 }
 0x12f   :  { %v423_v6 = vadd.f32 %v422_v1, %v1431_v57  ;;  %v674_v8 = vmax.f32 %v420_v62, 0.0 }
 0x130   :  { %v677_v20 = vmax.f32 %v431_v9, 0.0 }
 0x131   :  { %v675_v10 = vmax.f32 %v423_v6, 0.0 }
 0x133   :  { %v738_v14 = vadd.f32 %v675_v10, %v674_v8  ;;  %v1061_v15 = vpop.f32.mrb[4].mxu0  ;;  %v1446_v16 = vpop.f32.mrb[4].mxu1 }
 0x134   :  { %v435_v18 = vpop.f32.mrb[5].mxu0  ;;  %v1449_v19 = vpop.f32.mrb[5].mxu1  ;;  %v444_v29 = vadd.f32 %v1061_v15, %v1431_v57 }
 0x135   :  { %v739_v21 = vadd.f32 %v738_v14, %v676_v13  ;;  %v436_v22 = vadd.f32 %v435_v18, %v1431_v57  ;;  %v1062_v23 = vpop.f32.mrb[6].mxu0  ;;  %v1452_v24 = vpop.f32.mrb[6].mxu1 }
 0x136   :  { %v438_v25 = vpop.f32.mrb[7].mxu0  ;;  %v1454_v26 = vpop.f32.mrb[7].mxu1  ;;  %v447_v37 = vadd.f32 %v1062_v23, %v1431_v57  ;;  %v680_v40 = vmax.f32 %v444_v29, 0.0 }
 0x137   :  { %v678_v30 = vmax.f32 %v436_v22, 0.0  ;;  %v740_v31 = vadd.f32 %v739_v21, %v677_v20  ;;  %v439_v32 = vadd.f32 %v438_v25, %v1431_v57 }
 0x138   :  { %v681_v48 = vmax.f32 %v447_v37, 0.0 }
 0x139   :  { %v741_v36 = vadd.f32 %v740_v31, %v678_v30  ;;  %v679_v38 = vmax.f32 %v439_v32, 0.0 }
 0x13b   :  { %v742_v41 = vadd.f32 %v741_v36, %v679_v38  ;;  %v1065_v43 = vpop.f32.mrb[8].mxu0  ;;  %v1460_v44 = vpop.f32.mrb[8].mxu1 }
 0x13c   :  { %v451_v46 = vpop.f32.mrb[9].mxu0  ;;  %v1463_v47 = vpop.f32.mrb[9].mxu1  ;;  %v460_v58 = vadd.f32 %v1065_v43, %v1431_v57 }
 0x13d   :  { %v743_v49 = vadd.f32 %v742_v41, %v680_v40  ;;  %v452_v50 = vadd.f32 %v451_v46, %v1431_v57  ;;  %v1066_v52 = vpop.f32.mrb[10].mxu0  ;;  %v1466_v53 = vpop.f32.mrb[10].mxu1 }
 0x13e   :  { %v454_v54 = vpop.f32.mrb[11].mxu0  ;;  %v1468_v56 = vpop.f32.mrb[11].mxu1  ;;  %v463_v1 = vadd.f32 %v1066_v52, %v1431_v57  ;;  %v684_v4 = vmax.f32 %v460_v58, 0.0 }
 0x13f   :  { %v682_v42 = vmax.f32 %v452_v50, 0.0  ;;  %v744_v60 = vadd.f32 %v743_v49, %v681_v48  ;;  %v455_v62 = vadd.f32 %v454_v54, %v1431_v57 }
 0x140   :  { %v685_v10 = vmax.f32 %v463_v1, 0.0 }
 0x141   :  { %v745_v63 = vadd.f32 %v744_v60, %v682_v42  ;;  %v683_v3 = vmax.f32 %v455_v62, 0.0 }
 0x143   :  { %v746_v5 = vadd.f32 %v745_v63, %v683_v3  ;;  %v1069_v6 = vpop.f32.mrb[12].mxu0  ;;  %v1473_v7 = vpop.f32.mrb[12].mxu1 }
 0x144   :  { %v467_v8 = vpop.f32.mrb[13].mxu0  ;;  %v1475_v9 = vpop.f32.mrb[13].mxu1  ;;  %v476_v18 = vadd.f32 %v1069_v6, %v1431_v57 }
 0x145   :  { %v747_v11 = vadd.f32 %v746_v5, %v684_v4  ;;  %v468_v12 = vadd.f32 %v467_v8, %v1431_v57  ;;  %v1070_v13 = vpop.f32.mrb[14].mxu0  ;;  %v1478_v14 = vpop.f32.mrb[14].mxu1 }
 0x146   :  { %v470_v15 = vpop.f32.mrb[15].mxu0  ;;  %v1480_v17 = vpop.f32.mrb[15].mxu1  ;;  %v479_v25 = vadd.f32 %v1070_v13, %v1431_v57  ;;  %v688_v28 = vmax.f32 %v476_v18, 0.0 }
 0x147   :  { %v686_v20 = vmax.f32 %v468_v12, 0.0  ;;  %v748_v21 = vadd.f32 %v747_v11, %v685_v10  ;;  %v471_v22 = vadd.f32 %v470_v15, %v1431_v57 }
 0x148   :  { %v689_v34 = vmax.f32 %v479_v25, 0.0 }
 0x149   :  { %v749_v23 = vadd.f32 %v748_v21, %v686_v20  ;;  %v687_v27 = vmax.f32 %v471_v22, 0.0 }
 0x14b   :  { %v750_v29 = vadd.f32 %v749_v23, %v687_v27  ;;  %v1073_v30 = vpop.f32.mrb[16].mxu0  ;;  %v1485_v31 = vpop.f32.mrb[16].mxu1 }
 0x14c   :  { %v483_v32 = vpop.f32.mrb[17].mxu0  ;;  %v1487_v33 = vpop.f32.mrb[17].mxu1  ;;  %v492_v41 = vadd.f32 %v1073_v30, %v1431_v57 }
 0x14d   :  { %v751_v35 = vadd.f32 %v750_v29, %v688_v28  ;;  %v484_v36 = vadd.f32 %v483_v32, %v1431_v57  ;;  %v1074_v37 = vpop.f32.mrb[18].mxu0  ;;  %v1490_v38 = vpop.f32.mrb[18].mxu1 }
 0x14e   :  { %v486_v39 = vpop.f32.mrb[19].mxu0  ;;  %v1492_v40 = vpop.f32.mrb[19].mxu1  ;;  %v495_v49 = vadd.f32 %v1074_v37, %v1431_v57  ;;  %v692_v52 = vmax.f32 %v492_v41, 0.0 }
 0x14f   :  { %v690_v43 = vmax.f32 %v484_v36, 0.0  ;;  %v752_v45 = vadd.f32 %v751_v35, %v689_v34  ;;  %v487_v46 = vadd.f32 %v486_v39, %v1431_v57 }
 0x150   :  { %v693_v63 = vmax.f32 %v495_v49, 0.0 }
 0x151   :  { %v753_v48 = vadd.f32 %v752_v45, %v690_v43  ;;  %v691_v50 = vmax.f32 %v487_v46, 0.0 }
 0x153   :  { %v754_v54 = vadd.f32 %v753_v48, %v691_v50  ;;  %v1077_v58 = vpop.f32.mrb[20].mxu0  ;;  %v1497_v42 = vpop.f32.mrb[20].mxu1 }
 0x154   :  { %v499_v60 = vpop.f32.mrb[21].mxu0  ;;  %v1499_v62 = vpop.f32.mrb[21].mxu1  ;;  %v508_v10 = vadd.f32 %v1077_v58, %v1431_v57 }
 0x155   :  { %v755_v1 = vadd.f32 %v754_v54, %v692_v52  ;;  %v500_v3 = vadd.f32 %v499_v60, %v1431_v57  ;;  %v1078_v4 = vpop.f32.mrb[22].mxu0  ;;  %v1502_v5 = vpop.f32.mrb[22].mxu1 }
 0x156   :  { %v502_v6 = vpop.f32.mrb[23].mxu0  ;;  %v1504_v8 = vpop.f32.mrb[23].mxu1  ;;  %v511_v18 = vadd.f32 %v1078_v4, %v1431_v57  ;;  %v696_v21 = vmax.f32 %v508_v10, 0.0 }
 0x157   :  { %v694_v11 = vmax.f32 %v500_v3, 0.0  ;;  %v756_v12 = vadd.f32 %v755_v1, %v693_v63  ;;  %v503_v13 = vadd.f32 %v502_v6, %v1431_v57 }
 0x158   :  { %v697_v29 = vmax.f32 %v511_v18, 0.0 }
 0x159   :  { %v757_v15 = vadd.f32 %v756_v12, %v694_v11  ;;  %v695_v20 = vmax.f32 %v503_v13, 0.0 }
 0x15b   :  { %v758_v22 = vadd.f32 %v757_v15, %v695_v20  ;;  %v1081_v23 = vpop.f32.mrb[24].mxu0  ;;  %v1509_v25 = vpop.f32.mrb[24].mxu1 }
 0x15c   :  { %v515_v27 = vpop.f32.mrb[25].mxu0  ;;  %v1511_v28 = vpop.f32.mrb[25].mxu1  ;;  %v524_v39 = vadd.f32 %v1081_v23, %v1431_v57 }
 0x15d   :  { %v759_v30 = vadd.f32 %v758_v22, %v696_v21  ;;  %v516_v32 = vadd.f32 %v515_v27, %v1431_v57  ;;  %v1082_v34 = vpop.f32.mrb[26].mxu0  ;;  %v1514_v35 = vpop.f32.mrb[26].mxu1 }
 0x15e   :  { %v518_v36 = vpop.f32.mrb[27].mxu0  ;;  %v1516_v37 = vpop.f32.mrb[27].mxu1  ;;  %v527_v48 = vadd.f32 %v1082_v34, %v1431_v57  ;;  %v700_v50 = vmax.f32 %v524_v39, 0.0 }
 0x15f   :  { %v698_v41 = vmax.f32 %v516_v32, 0.0  ;;  %v760_v43 = vadd.f32 %v759_v30, %v697_v29  ;;  %v519_v45 = vadd.f32 %v518_v36, %v1431_v57 }
 0x160   :  { %v701_v60 = vmax.f32 %v527_v48, 0.0  ;;  %v564_v48 = vadd.f32 %v1436_v61, %v1431_v57  ;;  %v580_v61 = vadd.f32 %v1449_v19, %v1431_v57  ;;  %v596_v19 = vadd.f32 %v1463_v47, %v1431_v57 }
 0x161   :  { %v761_v46 = vadd.f32 %v760_v43, %v698_v41  ;;  %v699_v49 = vmax.f32 %v519_v45, 0.0  ;;  %v612_v47 = vadd.f32 %v1475_v9, %v1431_v57  ;;  %v628_v9 = vadd.f32 %v1487_v33, %v1431_v57 }
 0x162   :  { %v644_v33 = vadd.f32 %v1499_v62, %v1431_v57  ;;  %v660_v62 = vadd.f32 %v1511_v28, %v1431_v57  ;;  %v671_v28 = vadd.f32 %v1514_v35, %v1431_v57  ;;  %v833_v35 = vsub.s32 1, %v1421_v51 }
 0x163   :  { %v762_v52 = vadd.f32 %v761_v46, %v699_v49  ;;  %v1085_v54 = vpop.f32.mrb[28].mxu0 }
 0x164   :  { %v531_v58 = vpop.f32.mrb[29].mxu0  ;;  %v540_v6 = vadd.f32 %v1085_v54, %v1431_v57 }
 0x165   :  { %v763_v63 = vadd.f32 %v762_v52, %v700_v50  ;;  %v532_v1 = vadd.f32 %v531_v58, %v1431_v57  ;;  %v1086_v3 = vpop.f32.mrb[30].mxu0  ;;  %v710_v58 = vmax.f32 %v564_v48, 0.0  ;;  %v722_v48 = vmax.f32 %v612_v47, 0.0 }
 0x166   :  { %v534_v4 = vpop.f32.mrb[31].mxu0  ;;  %v543_v15 = vadd.f32 %v1086_v3, %v1431_v57  ;;  %v704_v20 = vmax.f32 %v540_v6, 0.0 }
 0x167   :  { %v702_v10 = vmax.f32 %v532_v1, 0.0  ;;  %v764_v11 = vadd.f32 %v763_v63, %v701_v60  ;;  %v535_v12 = vadd.f32 %v534_v4, %v1431_v57  ;;  %v567_v60 = vadd.f32 %v1441_v2, %v1431_v57 }
 0x168   :  { %v705_v27 = vmax.f32 %v543_v15, 0.0  ;;  %v572_v63 = vadd.f32 %v1434_v59, %v1431_v57  ;;  %v575_v4 = vadd.f32 %v1439_v0, %v1431_v57  ;;  %v714_v15 = vmax.f32 %v580_v61, 0.0 }
 0x169   :  { %v765_v13 = vadd.f32 %v764_v11, %v702_v10  ;;  %v703_v18 = vmax.f32 %v535_v12, 0.0  ;;  %v711_v6 = vmax.f32 %v567_v60, 0.0  ;;  %v583_v2 = vadd.f32 %v1454_v26, %v1431_v57 }
 0x16a   :  { %v712_v10 = vmax.f32 %v572_v63, 0.0  ;;  %v713_v12 = vmax.f32 %v575_v4, 0.0  ;;  %v588_v59 = vadd.f32 %v1446_v16, %v1431_v57  ;;  %v591_v0 = vadd.f32 %v1452_v24, %v1431_v57 }
 0x16b   :  { %v766_v21 = vadd.f32 %v765_v13, %v703_v18  ;;  %v1089_v22 = vpop.f32.mrb[32].mxu0  ;;  %v599_v26 = vadd.f32 %v1468_v56, %v1431_v57  ;;  %v604_v16 = vadd.f32 %v1460_v44, %v1431_v57  ;;  %v607_v24 = vadd.f32 %v1466_v53, %v1431_v57 }
 0x16c   :  { %v547_v23 = vpop.f32.mrb[33].mxu0  ;;  %v556_v39 = vadd.f32 %v1089_v22, %v1431_v57  ;;  %v716_v22 = vmax.f32 %v588_v59, 0.0  ;;  %v615_v56 = vadd.f32 %v1480_v17, %v1431_v57  ;;  %v620_v44 = vadd.f32 %v1473_v7, %v1431_v57 }
 0x16d   :  { %v767_v29 = vadd.f32 %v766_v21, %v704_v20  ;;  %v548_v30 = vadd.f32 %v547_v23, %v1431_v57  ;;  %v1090_v32 = vpop.f32.mrb[34].mxu0  ;;  %v715_v21 = vmax.f32 %v583_v2, 0.0  ;;  %v623_v53 = vadd.f32 %v1478_v14, %v1431_v57 }
 0x16e   :  { %v550_v34 = vpop.f32.mrb[35].mxu0  ;;  %v559_v45 = vadd.f32 %v1090_v32, %v1431_v57  ;;  %v708_v49 = vmax.f32 %v556_v39, 0.0  ;;  %v719_v39 = vmax.f32 %v599_v26, 0.0  ;;  %v631_v17 = vadd.f32 %v1492_v40, %v1431_v57 }
 0x16f   :  { %v1526_v36 = vadd.f32 %v767_v29, %v705_v27  ;;  %v551_v41 = vadd.f32 %v550_v34, %v1431_v57  ;;  %v706_v43 = vmax.f32 %v548_v30, 0.0  ;;  %v717_v27 = vmax.f32 %v591_v0, 0.0 }
 0x170   :  { %v709_v52 = vmax.f32 %v559_v45, 0.0  ;;  %v718_v30 = vmax.f32 %v596_v19, 0.0  ;;  %v721_v45 = vmax.f32 %v607_v24, 0.0  ;;  %v725_v60 = vmax.f32 %v623_v53, 0.0 }
 0x171   :  { %v707_v46 = vmax.f32 %v551_v41, 0.0  ;;  %v720_v41 = vmax.f32 %v604_v16, 0.0  ;;  %v636_v7 = vadd.f32 %v1485_v31, %v1431_v57  ;;  %v639_v14 = vadd.f32 %v1490_v38, %v1431_v57 }
 0x172   :  { %v647_v40 = vadd.f32 %v1504_v8, %v1431_v57  ;;  %v652_v31 = vadd.f32 %v1497_v42, %v1431_v57  ;;  %v655_v2 = vadd.f32 %v1502_v5, %v1431_v57  ;;  %v663_v8 = vadd.f32 %v1516_v37, %v1431_v57 }
 0x173   :  { %v775_v50 = vadd.f32 %v707_v46, %v706_v43  ;;  %v728_v61 = vmax.f32 %v636_v7, 0.0  ;;  %v668_v42 = vadd.f32 %v1509_v25, %v1431_v57 }
 0x174   :  { %v731_v59 = vmax.f32 %v647_v40, 0.0  ;;  %v733_v0 = vmax.f32 %v655_v2, 0.0 }
 0x175   :  { %v776_v54 = vadd.f32 %v775_v50, %v708_v49 }
 0x177   :  { %v777_v1 = vadd.f32 %v776_v54, %v709_v52  ;;  %v723_v52 = vmax.f32 %v615_v56, 0.0  ;;  %v724_v54 = vmax.f32 %v620_v44, 0.0  ;;  %v834_v44 = vrot.slane %v1428_v55, %v833_v35 }
 0x179   :  { %v778_v3 = vadd.f32 %v777_v1, %v710_v58  ;;  %v726_v1 = vmax.f32 %v628_v9, 0.0 }
 0x17b   :  { %v779_v11 = vadd.f32 %v778_v3, %v711_v6  ;;  %v727_v6 = vmax.f32 %v631_v17, 0.0 }
 0x17d   :  { %v780_v13 = vadd.f32 %v779_v11, %v712_v10  ;;  %v729_v11 = vmax.f32 %v639_v14, 0.0 }
 0x17f   :  { %v781_v18 = vadd.f32 %v780_v13, %v713_v12  ;;  %v730_v13 = vmax.f32 %v644_v33, 0.0 }
 0x181   :  { %v782_v20 = vadd.f32 %v781_v18, %v714_v15  ;;  %v732_v18 = vmax.f32 %v652_v31, 0.0 }
 0x183   :  { %v783_v23 = vadd.f32 %v782_v20, %v715_v21  ;;  %v769_v21 = vrot.slane %v1526_v36, 4 }
 0x185   :  { %v784_v29 = vadd.f32 %v783_v23, %v716_v22  ;;  %v734_v22 = vmax.f32 %v660_v62, 0.0  ;;  %v770_v5 = vadd.f32 %v769_v21, %v1526_v36 }
 0x187   :  { %v785_v32 = vadd.f32 %v784_v29, %v717_v27  ;;  %v735_v29 = vmax.f32 %v663_v8, 0.0  ;;  %v771_v16 = vrot.slane %v770_v5, 2 }
 0x189   :  { %v786_v34 = vadd.f32 %v785_v32, %v718_v30  ;;  %v736_v30 = vmax.f32 %v668_v42, 0.0  ;;  %v737_v32 = vmax.f32 %v671_v28, 0.0 }
 0x18b   :  { %v787_v43 = vadd.f32 %v786_v34, %v719_v39  ;;  %v772_v39 = vadd.f32 %v771_v16, %v770_v5 }
 0x18d   :  { %v788_v46 = vadd.f32 %v787_v43, %v720_v41  ;;  %v773_v43 = vrot.slane %v772_v39, 1 }
 0x18f   :  { %v789_v49 = vadd.f32 %v788_v46, %v721_v45  ;;  %v774_v45 = vadd.f32 %v773_v43, %v772_v39 }
 0x191   :  { %v790_v50 = vadd.f32 %v789_v49, %v722_v48  ;;  %v813_v48 = vmul.f32 0.00390625, %v774_v45  ;;  %v913_v49 = vsub.s32 2, %v1421_v51 }
 0x193   :  { %v791_v58 = vadd.f32 %v790_v50, %v723_v52  ;;  %v914_v9 = vrot.slane %v1428_v55, %v913_v49 }
 0x195   :  { %v792_v63 = vadd.f32 %v791_v58, %v724_v54 }
 0x197   :  { %v793_v3 = vadd.f32 %v792_v63, %v725_v60  ;;  %v922_v63 = vsub.s32 3, %v1421_v51 }
 0x199   :  { %v794_v4 = vadd.f32 %v793_v3, %v726_v1  ;;  %v923_v1 = vrot.slane %v1428_v55, %v922_v63 }
 0x19b   :  { %v795_v10 = vadd.f32 %v794_v4, %v727_v6 }
 0x19d   :  { %v796_v12 = vadd.f32 %v795_v10, %v728_v61 }
 0x19f   :  { %v797_v15 = vadd.f32 %v796_v12, %v729_v11 }
 0x1a1   :  { %v798_v38 = vadd.f32 %v797_v15, %v730_v13 }
 0x1a3   :  { %v799_v20 = vadd.f32 %v798_v38, %v731_v59 }
 0x1a5   :  { %v800_v19 = vadd.f32 %v799_v20, %v732_v18 }
 0x1a7   :  { %v801_v23 = vadd.f32 %v800_v19, %v733_v0 }
 0x1a9   :  { %v802_v27 = vadd.f32 %v801_v23, %v734_v22 }
 0x1ab   :  { %v803_v26 = vadd.f32 %v802_v27, %v735_v29 }
 0x1ad   :  { %v804_v34 = vadd.f32 %v803_v26, %v736_v30 }
 0x1af   :  { %v805_v24 = vadd.f32 %v804_v34, %v737_v32 }
 0x1b1   :  { %v806_v47 = vrot.slane %v805_v24, 4 }
 0x1b3   :  { %v807_v37 = vadd.f32 %v806_v47, %v805_v24 }
 0x1b5   :  { %v808_v41 = vrot.slane %v807_v37, 2 }
 0x1b7   :  { %v809_v25 = vadd.f32 %v808_v41, %v807_v37 }
 0x1b9   :  { %v810_v46 = vrot.slane %v809_v25, 1 }
 0x1bb   :  { %v811_v36 = vadd.f32 %v810_v46, %v809_v25 }
 0x1bd   :  { %v814_v56 = vmul.f32 0.00390625, %v811_v36 }
 0x1bf   :  { %v838_v57 = vsel %vm837_vm1, %v814_v56, %v813_v48 }
 0x1c0   :  { %1152 = vmatmul.mubr.f32.vlgmr.msra.gmra.mrb[28].mxu1 %v838_v57 }
 0x293   :  { %v906_v50 = vpop.f32.mrb[28].mxu1 }
 0x294   :  { %v907_v53 = vadd.f32 %v906_v50, %v834_v44  ;;  %v1153_v52 = vpop.f32.mrb[29].mxu1 }
 0x296   :  { %v910_v54 = vmax.f32 %v907_v53, 0.0 }
 0x298   :  { %v915_v58 = vmul.f32 %v914_v9, %v910_v54 }
 0x29a   :  { %v917_v60 = vsel %vm916_vm2, %v915_v58, 0.0 }
 0x29b   :  { %918 = vadd.xlane.f32.xlu0 %v917_v60 }
 0x328   :  { %v919_v17 = vpop.xlane.xlu0 %918 }
 0x329   :  { %v924_v7 = vadd.f32 %v923_v1, %v919_v17 }
 0x32b   :  { %925 = vst [vmem:[#allocation8] sm:$0x3] %v924_v7 }
 0x32c   :  { %1322 = shalt.err (!%p1319_p0)
}
 0x32d   :  { %s1323_s6 = scalar_lea.hbm %s1611_s4, 32 }
 0x32e   :  { %p1324_p1 = scmp.ne.s32.totalorder %s1611_s4, %s1323_s6  ;;  %p1327_p2 = scmp.lt.u32.totalorder %s1323_s6, %s1611_s4 }
 0x330   :  { %p1329_p3 = pnand %p1327_p2, %p1324_p1 }
 0x332   :  { %1332 = shalt.err (!%p1329_p3)
}
 0x333   :  { %935 = dma.vmem_to_hbm [thread:$0]  %s933_s28, 32, %s1611_s4, [#allocation4]  }
 0x334   :  { %1337 = dma.done.wait [#allocation4], 32  }
 0x335   :  { %1338 = vsyncadd [#allocation4], 4294967264 }
 0x336   :  { %939 = vsyncpa [#allocation3], 1 }
 0x337   :  { %940 = vsyncpa [#allocation6], 1 }
 0x338   :  { %941 = vsyncpa [#allocation4], 1 }

</bundles_post_ra>
